<compile_context>
chip_gen: v6e
topology: v6e:2x2x1
jax: 0.10.0
libtpu: 0.0.40
codegen_flags: <defaults>
</compile_context>

<pallas_src>
import functools

import jax
import jax.numpy as jnp
from jax.experimental import pallas as pl
from jax.experimental.pallas import tpu as pltpu


def _round_up(x: int, m: int) -> int:
    return ((x + m - 1) // m) * m


def _pad128(n: int) -> int:
    return _round_up(max(int(n), 1), 128)


_MAX_TB = 8192  # upper bound on the batch tile (multi-MB blocks, amortizes per-step overhead)


# ----------------------------- kernels --------------------------------------


def _mlp_kernel(xs_ref, xt_ref, w1s_ref, w1t_ref, b1_ref, w2_ref, b2_ref, o_ref,
                *, col0, n_win):
    cdt = w1t_ref.dtype  # bf16 compute dtype for the MXU
    # Windowed temporal features = trailing window_size*n_feats lanes of the
    # row-major flattened sequence (static slice, no reshape/relayout).
    xw = xt_ref[:, pl.ds(col0, n_win)].astype(cdt)
    h = jnp.dot(xw, w1t_ref[...], preferred_element_type=jnp.float32)
    h = h + jnp.dot(xs_ref[...].astype(cdt), w1s_ref[...],
                    preferred_element_type=jnp.float32)
    h = jnp.maximum(h + b1_ref[...], 0.0)            # bias + ReLU in f32
    o = jnp.dot(h.astype(cdt), w2_ref[...], preferred_element_type=jnp.float32)
    o_ref[...] = (o + b2_ref[...]).astype(o_ref.dtype)


def _mlp_kernel_no_static(xt_ref, w1t_ref, b1_ref, w2_ref, b2_ref, o_ref,
                          *, col0, n_win):
    cdt = w1t_ref.dtype
    xw = xt_ref[:, pl.ds(col0, n_win)].astype(cdt)
    h = jnp.dot(xw, w1t_ref[...], preferred_element_type=jnp.float32)
    h = jnp.maximum(h + b1_ref[...], 0.0)
    o = jnp.dot(h.astype(cdt), w2_ref[...], preferred_element_type=jnp.float32)
    o_ref[...] = (o + b2_ref[...]).astype(o_ref.dtype)


# ----------------------------- tiling / VMEM ---------------------------------


def _vmem_limit_bytes() -> int:
    """Explicit scoped-VMEM limit: ~75% of physical VMEM, capped at 96 MiB.
    (v5e/v6e: 128 MiB physical -> 96 MiB; v7x: 64 MiB per TC -> 48 MiB.)"""
    try:
        cap = int(pltpu.get_tpu_info().vmem_capacity_bytes)
    except Exception:
        cap = 64 << 20  # conservative fallback (v7x per-TensorCore VMEM)
    return min((cap * 3) // 4, 96 << 20)


def _choose_tb(B, n_static, n_flat, n_win, n_hid_pad, n_out, in_bytes,
               vmem_limit, weight_bytes):
    """Largest batch tile whose per-step VMEM working set (lane-padded widths,
    double-buffered pipelined blocks, resident weights, in-kernel intermediates)
    fits in ~70% of vmem_limit, while keeping >=2 grid steps for v7x megacore
    and >=4 steps for deep pipelining at large B."""
    # Pipelined (double-buffered) activation blocks.
    per_row = 2 * _pad128(n_flat) * in_bytes + 2 * _pad128(n_out) * 4
    if n_static > 0:
        per_row += 2 * _pad128(n_static) * in_bytes
    # In-kernel intermediates that overflow the vreg file live in VMEM:
    # bf16 copies of the x slices, f32 hidden (+ReLU copy), bf16 hidden, f32 out.
    per_row += (_pad128(n_win) + _pad128(n_static)) * (in_bytes + 2)
    per_row += 3 * n_hid_pad * 4 + n_hid_pad * 2 + _pad128(n_out) * 4

    budget = (vmem_limit * 7) // 10 - 2 * weight_bytes  # weights double-buffered
    budget = max(budget, 8 * per_row)

    tb = max(8, budget // per_row)
    if B >= 4 * 1024:
        min_steps = 4
    elif B >= 16:
        min_steps = 2
    else:
        min_steps = 1
    tb = min(tb, _MAX_TB, _round_up(pl.cdiv(B, min_steps), 8))
    tb = max(8, (tb // 8) * 8)
    return B if tb >= B else tb


# ----------------------------- wrapper ---------------------------------------


def window_mlp_pallas(xs, xt_flat, w1s, w1t, b1, w2, b2, window_size, n_feats):
    """xs: (B, n_static) or None; xt_flat: (B, seq_len*n_feats) row-major
    flatten of temporal_data (free bitcast, no HBM copy);
    w1s: (n_static, Hpad) bf16; w1t: (W*F, Hpad) bf16; b1: (1, Hpad) f32;
    w2: (Hpad, n_out) bf16 (zero-padded rows); b2: (1, n_out) f32."""
    has_static = xs is not None and xs.shape[1] > 0
    B, n_flat = xt_flat.shape
    n_static = xs.shape[1] if has_static else 0
    n_win = window_size * n_feats
    col0 = n_flat - n_win
    n_hid_pad = w1t.shape[1]
    n_out = w2.shape[1]
    in_bytes = xt_flat.dtype.itemsize

    w_args = ([w1s] if has_static else []) + [w1t, b1, w2, b2]
    weight_bytes = sum(int(w.size) * w.dtype.itemsize for w in w_args)

    vmem_limit = _vmem_limit_bytes()
    tb = _choose_tb(B, n_static, n_flat, n_win, n_hid_pad, n_out, in_bytes,
                    vmem_limit, weight_bytes)
    grid = (pl.cdiv(B, tb),)

    def bmap(i):          # batch-tiled operands
        return (i, 0)

    def wmap(i):          # VMEM-resident weights / biases
        return (0, 0)

    x_args, x_specs = [], []
    if has_static:
        x_args.append(xs)
        x_specs.append(pl.BlockSpec((tb, n_static), bmap))
    x_args.append(xt_flat)
    x_specs.append(pl.BlockSpec((tb, n_flat), bmap))
    w_specs = [pl.BlockSpec(w.shape, wmap) for w in w_args]

    kernel = functools.partial(
        _mlp_kernel if has_static else _mlp_kernel_no_static,
        col0=col0, n_win=n_win)

    flops = 2 * B * ((n_static + n_win) * n_hid_pad + n_hid_pad * n_out)
    bytes_accessed = B * ((n_static + n_flat) * in_bytes + n_out * 4) + weight_bytes

    return pl.pallas_call(
        kernel,
        out_shape=jax.ShapeDtypeStruct((B, n_out), jnp.float32),
        grid=grid,
        in_specs=x_specs + w_specs,
        out_specs=pl.BlockSpec((tb, n_out), bmap),
        compiler_params=pltpu.CompilerParams(
            dimension_semantics=("parallel",),
            vmem_limit_bytes=vmem_limit,
        ),
        cost_estimate=pl.CostEstimate(
            flops=flops, transcendentals=0, bytes_accessed=bytes_accessed),
    )(*x_args, *w_args)


# ----------------------------- module port -----------------------------------


class WindowLinearLayerPallas:
    """JAX/Pallas port of synthcity's WindowLinearLayer (n_layers=1, relu,
    dropout=0, regression). Weights stored bf16, accumulation f32."""

    def __init__(self, n_static_units_in, n_temporal_units_in, window_size,
                 n_units_out, n_units_hidden=100, key=None):
        self.window_size = window_size
        self.n_static_units_in = n_static_units_in
        self.n_temporal_units_in = n_temporal_units_in
        self.n_units_hidden = n_units_hidden
        n_units_in = n_static_units_in + n_temporal_units_in * window_size
        h_pad = _round_up(n_units_hidden, 128)  # lane-dense hidden axis

        if key is None:
            key = jax.random.PRNGKey(0)
        k1, k2, k3, k4 = jax.random.split(key, 4)
        # Deterministic init (uniform, Kaiming-like scale). Stored as (in, out):
        # x @ W + b == PyTorch x @ W.T + b.
        s1 = 1.0 / jnp.sqrt(jnp.float32(n_units_in))
        s2 = 1.0 / jnp.sqrt(jnp.float32(n_units_hidden))
        w1 = jax.random.uniform(k1, (n_units_in, n_units_hidden), jnp.float32, -s1, s1)
        b1 = jax.random.uniform(k2, (1, n_units_hidden), jnp.float32, -s1, s1)
        w2 = jax.random.uniform(k3, (n_units_hidden, n_units_out), jnp.float32, -s2, s2)
        b2 = jax.random.uniform(k4, (1, n_units_out), jnp.float32, -s2, s2)

        # Zero-pad hidden axis to h_pad: padded w2 rows are zero, so padded
        # hidden units contribute exactly nothing -> identical output.
        pad_h = h_pad - n_units_hidden
        w1 = jnp.pad(w1, ((0, 0), (0, pad_h)))
        b1 = jnp.pad(b1, ((0, 0), (0, pad_h)))
        w2 = jnp.pad(w2, ((0, pad_h), (0, 0)))

        # bf16 storage for the matmul operands; biases stay f32.
        self.w1_static = w1[:n_static_units_in].astype(jnp.bfloat16)
        self.w1_temporal = w1[n_static_units_in:].astype(jnp.bfloat16)
        self.b1 = b1
        self.w2 = w2.astype(jnp.bfloat16)
        self.b2 = b2

    def __call__(self, static_data, temporal_data):
        if self.n_static_units_in > 0 and static_data.shape[0] != temporal_data.shape[0]:
            raise ValueError("Length mismatch between static and temporal data")
        B, S, F = temporal_data.shape
        if self.window_size > S:
            raise ValueError("window_size larger than sequence length")
        # Layout-preserving row-major flatten (bitcast, no HBM copy). The window
        # [:, S-W:, :] corresponds exactly to the trailing W*F columns, which
        # the kernel slices in VMEM -- no windowed copy ever hits HBM.
        xt_flat = temporal_data.reshape(B, S * F)
        xs = static_data if self.n_static_units_in > 0 else None
        return window_mlp_pallas(xs, xt_flat, self.w1_static, self.w1_temporal,
                                 self.b1, self.w2, self.b2, self.window_size, F)


# ----------------------------- reference & demo ------------------------------


def _reference(model: WindowLinearLayerPallas, static_data, temporal_data):
    """Plain-JAX reference mirroring the kernel math (bf16-quantized operands,
    f32 accumulation) on the *unpadded* logical weights."""
    B, S, F = temporal_data.shape
    H = model.n_units_hidden

    def q(a):  # bf16 quantization used by the kernel's MXU operands
        return a.astype(jnp.bfloat16).astype(jnp.float32)

    tb = temporal_data[:, S - model.window_size:, :].reshape(
        B, F * model.window_size)
    w1t = model.w1_temporal.astype(jnp.float32)[:, :H]
    w1s = model.w1_static.astype(jnp.float32)[:, :H]
    b1 = model.b1[:, :H]
    w2 = model.w2.astype(jnp.float32)[:H, :]

    h = q(tb) @ w1t
    if model.n_static_units_in > 0:
        h = h + q(static_data) @ w1s
    h = q(jnp.maximum(h + b1, 0.0))
    return h @ w2 + model.b2


if __name__ == "__main__":
    # Small shapes consistent with the module's forward.
    batch = 8
    n_static_units_in = 4
    n_temporal_units_in = 4
    seq_len = 8
    window_size = 4
    n_units_hidden = 32
    n_units_out = 8

    key = jax.random.PRNGKey(0)
    k_params, k_static, k_temporal = jax.random.split(key, 3)

    model = WindowLinearLayerPallas(
        n_static_units_in=n_static_units_in,
        n_temporal_units_in=n_temporal_units_in,
        window_size=window_size,
        n_units_out=n_units_out,
        n_units_hidden=n_units_hidden,
        key=k_params,
    )

    static_data = jax.random.normal(k_static, (batch, n_static_units_in), jnp.float32)
    temporal_data = jax.random.normal(
        k_temporal, (batch, seq_len, n_temporal_units_in), jnp.float32)

    out = model(static_data, temporal_data)
    out = jax.block_until_ready(out)

    ref = _reference(model, static_data, temporal_data)
    assert out.shape == (batch, n_units_out)
    # bf16 operands / f32 accumulation: matches the mirrored reference tightly;
    # vs. a pure-f32 torch forward the deviation is at bf16 level (~1e-3 rel).
    assert jnp.allclose(out, ref, atol=2e-3, rtol=2e-3), \
        float(jnp.max(jnp.abs(out - ref)))

    print("KERNEL_OK")
</pallas_src>

<mosaic_0001>
module attributes {stable_mosaic.version = 11 : i64} {
  func.func @_mlp_kernel(%arg0: i32, %arg1: memref<8x4xf32, #tpu.memory_space<vmem>>, %arg2: memref<8x32xf32, #tpu.memory_space<vmem>>, %arg3: memref<4x128xbf16, #tpu.memory_space<vmem>>, %arg4: memref<16x128xbf16, #tpu.memory_space<vmem>>, %arg5: memref<1x128xf32, #tpu.memory_space<vmem>>, %arg6: memref<128x8xbf16, #tpu.memory_space<vmem>>, %arg7: memref<1x8xf32, #tpu.memory_space<vmem>>, %arg8: memref<8x8xf32, #tpu.memory_space<vmem>>) attributes {dimension_semantics = [#tpu.dimension_semantics<parallel>], iteration_bounds = array<i64: 1>, scalar_prefetch = 0 : i64, scratch_operands = 0 : i64, tpu.core_type = #tpu.core_type<tc>, window_params = [{transform_indices = @transform_0, window_bounds = array<i64: 8, 4>}, {transform_indices = @transform_1, window_bounds = array<i64: 8, 32>}, {pipeline_mode = #tpu.pipeline_mode<synchronous>, transform_indices = @transform_2, window_bounds = array<i64: 4, 128>}, {pipeline_mode = #tpu.pipeline_mode<synchronous>, transform_indices = @transform_3, window_bounds = array<i64: 16, 128>}, {pipeline_mode = #tpu.pipeline_mode<synchronous>, transform_indices = @transform_4, window_bounds = array<i64: 1, 128>}, {pipeline_mode = #tpu.pipeline_mode<synchronous>, transform_indices = @transform_5, window_bounds = array<i64: 128, 8>}, {pipeline_mode = #tpu.pipeline_mode<synchronous>, transform_indices = @transform_6, window_bounds = array<i64: 1, 8>}, {transform_indices = @transform_7, window_bounds = array<i64: 8, 8>}]} {
    %c0 = arith.constant 0 : index
    %c16 = arith.constant 16 : index
    %0 = vector.load %arg2[%c0, %c16] : memref<8x32xf32, #tpu.memory_space<vmem>>, vector<8x16xf32>
    %1 = arith.truncf %0 : vector<8x16xf32> to vector<8x16xbf16>
    %c0_0 = arith.constant 0 : index
    %c0_1 = arith.constant 0 : index
    %2 = vector.load %arg4[%c0_0, %c0_1] : memref<16x128xbf16, #tpu.memory_space<vmem>>, vector<16x128xbf16>
    %cst = arith.constant dense<0.000000e+00> : vector<8x128xf32>
    %3 = tpu.matmul %1, %2, %cst {dimension_numbers = #tpu.dot_dimension_numbers<[1], [0], [0], [1], [0, 0, 1, 1], [], []>} : vector<8x16xbf16>, vector<16x128xbf16>, vector<8x128xf32> -> vector<8x128xf32>
    %c0_2 = arith.constant 0 : index
    %c0_3 = arith.constant 0 : index
    %4 = vector.load %arg1[%c0_2, %c0_3] : memref<8x4xf32, #tpu.memory_space<vmem>>, vector<8x4xf32>
    %5 = arith.truncf %4 : vector<8x4xf32> to vector<8x4xbf16>
    %c0_4 = arith.constant 0 : index
    %c0_5 = arith.constant 0 : index
    %6 = vector.load %arg3[%c0_4, %c0_5] : memref<4x128xbf16, #tpu.memory_space<vmem>>, vector<4x128xbf16>
    %cst_6 = arith.constant dense<0.000000e+00> : vector<8x128xf32>
    %7 = tpu.matmul %5, %6, %cst_6 {dimension_numbers = #tpu.dot_dimension_numbers<[1], [0], [0], [1], [0, 0, 1, 1], [], []>} : vector<8x4xbf16>, vector<4x128xbf16>, vector<8x128xf32> -> vector<8x128xf32>
    %8 = arith.addf %3, %7 : vector<8x128xf32>
    %c0_7 = arith.constant 0 : index
    %c0_8 = arith.constant 0 : index
    %9 = vector.load %arg5[%c0_7, %c0_8] : memref<1x128xf32, #tpu.memory_space<vmem>>, vector<1x128xf32>
    %10 = vector.broadcast %9 : vector<1x128xf32> to vector<8x128xf32>
    %11 = arith.addf %8, %10 : vector<8x128xf32>
    %cst_9 = arith.constant 0.000000e+00 : f32
    %12 = vector.broadcast %cst_9 : f32 to vector<8x128xf32>
    %13 = arith.maximumf %11, %12 : vector<8x128xf32>
    %14 = arith.truncf %13 : vector<8x128xf32> to vector<8x128xbf16>
    %c0_10 = arith.constant 0 : index
    %c0_11 = arith.constant 0 : index
    %15 = vector.load %arg6[%c0_10, %c0_11] : memref<128x8xbf16, #tpu.memory_space<vmem>>, vector<128x8xbf16>
    %cst_12 = arith.constant dense<0.000000e+00> : vector<8x8xf32>
    %16 = tpu.matmul %14, %15, %cst_12 {dimension_numbers = #tpu.dot_dimension_numbers<[1], [0], [0], [1], [0, 0, 1, 1], [], []>} : vector<8x128xbf16>, vector<128x8xbf16>, vector<8x8xf32> -> vector<8x8xf32>
    %c0_13 = arith.constant 0 : index
    %c0_14 = arith.constant 0 : index
    %17 = vector.load %arg7[%c0_13, %c0_14] : memref<1x8xf32, #tpu.memory_space<vmem>>, vector<1x8xf32>
    %18 = vector.broadcast %17 : vector<1x8xf32> to vector<8x8xf32>
    %19 = arith.addf %16, %18 : vector<8x8xf32>
    %c0_15 = arith.constant 0 : index
    %c0_16 = arith.constant 0 : index
    %20 = vector.load %arg8[%c0_15, %c0_16] : memref<8x8xf32, #tpu.memory_space<vmem>>, vector<8x8xf32>
    tpu.vector_store %arg8[%c0_15, %c0_16], %19 {strides = array<i32>} : memref<8x8xf32, #tpu.memory_space<vmem>>, vector<8x8xf32>,
    return
  }
  func.func @transform_0(%arg0: i32) -> (i32, i32) {
    %c0_i32 = arith.constant 0 : i32
    %c0_i32_0 = arith.constant 0 : i32
    return %arg0, %c0_i32 : i32, i32
  }
  func.func @transform_1(%arg0: i32) -> (i32, i32) {
    %c0_i32 = arith.constant 0 : i32
    %c0_i32_0 = arith.constant 0 : i32
    return %arg0, %c0_i32 : i32, i32
  }
  func.func @transform_2(%arg0: i32) -> (i32, i32) {
    %c0_i32 = arith.constant 0 : i32
    %c0_i32_0 = arith.constant 0 : i32
    %c0_i32_1 = arith.constant 0 : i32
    return %c0_i32, %c0_i32_0 : i32, i32
  }
  func.func @transform_3(%arg0: i32) -> (i32, i32) {
    %c0_i32 = arith.constant 0 : i32
    %c0_i32_0 = arith.constant 0 : i32
    %c0_i32_1 = arith.constant 0 : i32
    return %c0_i32, %c0_i32_0 : i32, i32
  }
  func.func @transform_4(%arg0: i32) -> (i32, i32) {
    %c0_i32 = arith.constant 0 : i32
    %c0_i32_0 = arith.constant 0 : i32
    %c0_i32_1 = arith.constant 0 : i32
    return %c0_i32, %c0_i32_0 : i32, i32
  }
  func.func @transform_5(%arg0: i32) -> (i32, i32) {
    %c0_i32 = arith.constant 0 : i32
    %c0_i32_0 = arith.constant 0 : i32
    %c0_i32_1 = arith.constant 0 : i32
    return %c0_i32, %c0_i32_0 : i32, i32
  }
  func.func @transform_6(%arg0: i32) -> (i32, i32) {
    %c0_i32 = arith.constant 0 : i32
    %c0_i32_0 = arith.constant 0 : i32
    %c0_i32_1 = arith.constant 0 : i32
    return %c0_i32, %c0_i32_0 : i32, i32
  }
  func.func @transform_7(%arg0: i32) -> (i32, i32) {
    %c0_i32 = arith.constant 0 : i32
    %c0_i32_0 = arith.constant 0 : i32
    return %arg0, %c0_i32 : i32, i32
  }
}

</mosaic_0001>

<bundles_post_ra>
// kernel: tpu_custom_call.1
= control target key start
LH: loop header
LB: loop body
LE: loop exit
PB: predicated region body
PF: predicated region fallthrough
CT: control target
= control target key end

     0   :  { %vm39_vm0 = vcmask 1041408   ;;  %v366_v3 = vmov 0.0   ;;  %vm367_vm1 = vmmov 0   ;;  %vm35_vm2 = vcmask 31744   ;;  %s455_s0 = inlined_call_operand.vmem [shape: f32[8,4], index: 0, kind: input, shape index: {}]   ;;  %s456_s1 = inlined_call_operand.vmem [shape: f32[8,32], index: 1, kind: input, shape index: {}]   ;;  %s457_s2 = inlined_call_operand.vmem [shape: bf16[4,128], index: 2, kind: input, shape index: {}]   ;;  %s458_s3 = inlined_call_operand.vmem [shape: bf16[16,128], index: 3, kind: input, shape index: {}]   ;;  %s459_s4 = inlined_call_operand.vmem [shape: f32[1,128], index: 4, kind: input, shape index: {}]   ;;  %s460_s5 = inlined_call_operand.vmem [shape: bf16[128,8], index: 5, kind: input, shape index: {}]   ;;  %s461_s6 = inlined_call_operand.vmem [shape: f32[1,8], index: 6, kind: input, shape index: {}]   ;;  %s462_s7 = inlined_call_operand.hbm [shape: f32[8,8], index: 7, kind: output, shape index: {}]  }
   0x1   :  { %v28_v0 = vld [vmem:[%s456_s1] sm:$0xff]  ;;  %299 = vmatprep.subr.bf16.mxu1 %v366_v3  ;;  %311 = vmatprep.subr.bf16.mxu0 %v366_v3  ;;  %v336_v8 = vld [vmem:[%s460_s5 + $0x38] sm:$0xff]   ;;  %v337_v9 = vld [vmem:[%s460_s5 + $0x30] sm:$0xff]  }
   0x2   :  { %v34_v1 = vld [vmem:[%s457_s2] sm:$0x3]  ;;  %v29_v2 = vpack.c.bf16 %v28_v0, %v28_v0  ;;  %301 = vmatprep.mubr.msk.bf16.mxu1 %vm367_vm1, %v366_v3  ;;  %s368_s2 = smov 112   ;;  %327 = vmatprep.mubr.msk.bf16.mxu0 %vm367_vm1, %v366_v3 }
   0x3   :  { %v41_v4 = vsel %vm39_vm0, %v34_v1, 0  ;;  %v32_v5 = vld [vmem:[%s455_s0] sm:$0xff]  ;;  %312 = vmatpush3.bf16.msra.mxu0 %v336_v8 }
   0x4   :  { %300 = vmatpush3.bf16.msra.mxu1 %v41_v4  ;;  %v33_v6 = vpack.c.bf16 %v32_v5, %v32_v5  ;;  %v335_v7 = vld [vmem:[%s458_s3] sm:$0xff]   ;;  %84 = vrot.lane.b32.xlu0 %v29_v2, %s368_s2 }
   0x5   :  { %305 = vmatprep.subr.bf16.mxu1 %v366_v3  ;;  %313 = vmatprep.subr.bf16.mxu0 %v366_v3 }
   0x7   :  { %302 = vmatmul.mubr.msk.bf16.vlgmr.msra.gmra.mxu1 %vm35_vm2, %v33_v6 }
   0x8   :  { %306 = vmatpush3.bf16.msra.mxu1 %v335_v7  ;;  %307 = vmatprep.mubr.msk.bf16.mxu1 %vm367_vm1, %v366_v3 }
   0x9   :  { %12 = vsyncpa [#allocation3], 0  ;;  %314 = vmatpush3.bf16.msra.mxu0 %v337_v9  ;;  %v338_v10 = vld [vmem:[%s460_s5 + $0x28] sm:$0xff]   ;;  %v339_v11 = vld [vmem:[%s460_s5 + $0x20] sm:$0xff]   ;;  %vm92_vm3 = vcmask 130048   ;;  %s369_s25 = smov [#allocation2]  }
   0xa   :  { %315 = vmatprep.subr.bf16.mxu0 %v366_v3  ;;  %v340_v12 = vld [vmem:[%s460_s5 + $0x18] sm:$0xff]   ;;  %v341_v13 = vld [vmem:[%s460_s5 + $0x10] sm:$0xff]   ;;  %v342_v15 = vld [vmem:[%s460_s5 + $0x8] sm:$0xff]   ;;  %s265_s26 = sshll.u32 %s369_s25, 4  ;;  %vm257_vm4 = vcmask 64512   ;;  %s266_s26 = int_to_ptr.vmem [resolvable:$true] %s265_s26 }
   0xb   :  { %v343_v16 = vld [vmem:[%s460_s5] sm:$0xff]   ;;  %p349_p1 = scmp.lt.s32.totalorder %s266_s26, %s266_s26 }
   0xc   :  { %v276_v22 = vld [vmem:[%s459_s4] ss:$0 sm:$0xff]  ;;  %s344_s4 = scalar_lea.vmem %s266_s26, 128 }
   0xd   :  { %316 = vmatpush3.bf16.msra.mxu0 %v338_v10  ;;  %v277_v30 = vld [vmem:[%s461_s6] ss:$0 sm:$0xff]  ;;  %p345_p0 = scmp.ne.s32.totalorder %s266_s26, %s344_s4  ;;  %p350_p2 = scmp.lt.s32.totalorder %s344_s4, %s344_s4 }
   0xe   :  { %317 = vmatprep.subr.bf16.mxu0 %v366_v3 }
   0xf   :  { %p351_p3 = por %p350_p2, %p349_p1 }
  0x11   :  { %318 = vmatpush3.bf16.msra.mxu0 %v339_v11  ;;  %p352_p4 = pnand %p351_p3, %p345_p0 }
  0x12   :  { %319 = vmatprep.subr.bf16.mxu0 %v366_v3 }
  0x15   :  { %320 = vmatpush3.bf16.msra.mxu0 %v340_v12 }
  0x16   :  { %321 = vmatprep.subr.bf16.mxu0 %v366_v3 }
  0x19   :  { %322 = vmatpush3.bf16.msra.mxu0 %v341_v13 }
  0x1a   :  { %323 = vmatprep.subr.bf16.mxu0 %v366_v3 }
  0x1d   :  { %324 = vmatpush3.bf16.msra.mxu0 %v342_v15 }
  0x1e   :  { %325 = vmatprep.subr.bf16.mxu0 %v366_v3 }
  0x21   :  { %326 = vmatpush3.bf16.msra.mxu0 %v343_v16 }
  0x76   :  { %v85_v14 = vpop.permute.xlu0 %84 }
  0x77   :  { %308 = vmatmul.mubr.msk.bf16.vlgmr.msra.gmra.mxu1 %vm92_vm3, %v85_v14 }
  0xc7   :  { %v77_v17 = vpop.f32.mrf.mxu1 }
  0xc9   :  { %v303_v18 = vpop.f32.mrf.mxu1 }
  0xcb   :  { %v80_v19 = vpop.f32.mrf.mxu1 }
  0xcd   :  { %v304_v20 = vpop.f32.mrf.mxu1 }
 0x137   :  { %v130_v21 = vpop.f32.mrf.mxu1 }
 0x138   :  { %v131_v23 = vadd.f32 %v130_v21, %v77_v17 }
 0x139   :  { %v309_v24 = vpop.f32.mrf.mxu1 }
 0x13a   :  { %v143_v25 = vadd.f32 %v276_v22, %v131_v23 }
 0x13b   :  { %v133_v26 = vpop.f32.mrf.mxu1 }
 0x13c   :  { %v144_v27 = vmax.f32 %v143_v25, 0.0 }
 0x13d   :  { %v310_v28 = vpop.f32.mrf.mxu1 }
 0x13e   :  { %v145_v29 = vpack.c.bf16 %v144_v27, %v144_v27 }
 0x140   :  { %328 = vmatmul.mubr.bf16.vlgmr.msra.gmra.mxu0 %v145_v29 }
 0x200   :  { %v251_v31 = vpop.f32.mrf.mxu0 }
 0x201   :  { %v252_v32 = vadd.f32 %v277_v30, %v251_v31 }
 0x202   :  { %v329_v33 = vpop.f32.mrf.mxu0 }
 0x203   :  { %258 = vst.msk [vmem:[#allocation2] sm:$0xff] %vm257_vm4, %v252_v32 }
 0x204   :  { %v254_v34 = vpop.f32.mrf.mxu0 }
 0x205   :  { %355 = shalt.err (!%p352_p4)
}
 0x206   :  { %268 = dma.vmem_to_hbm [thread:$0]  %s266_s26, 128, %s462_s7, [#allocation3]   ;;  %v330_v35 = vpop.f32.mrf.mxu0 }
 0x207   :  { %364 = dma.done.wait [#allocation3], 128  }
 0x208   :  { %365 = vsyncadd [#allocation3], 4294967168 }
 0x209   :  { %272 = vsyncpa [#allocation3], 1 }

</bundles_post_ra>
